<compile_context>
chip_gen: v7x
topology: tpu7x:2x2x1
jax: 0.10.0
libtpu: 0.0.40
codegen_flags: <defaults>
</compile_context>

<pallas_src>
import functools

import jax
import jax.numpy as jnp
from jax.experimental import pallas as pl
from jax.experimental.pallas import tpu as pltpu


def _silu(x):
    return x * jax.nn.sigmoid(x)


def _device_kind():
    try:
        return jax.devices()[0].device_kind.lower()
    except Exception:
        return ""


def _is_v7(kind):
    return ("v7" in kind) or ("7x" in kind)


def _has_bf16_vpu(kind):
    # bf16 VALU / EUP exist on v6e and v7x; keep f32 elementwise elsewhere.
    return _is_v7(kind) or ("v6" in kind)


def _default_compute_dtype():
    return jnp.bfloat16 if _has_bf16_vpu(_device_kind()) else jnp.float32


def _const_spec(shape, index_map):
    # Grid-invariant weights / BN affines: single-buffered so they don't eat a
    # second ~8 MiB VMEM copy.  Falls back to the default if pipeline_mode is
    # unavailable in the installed jax.
    try:
        return pl.BlockSpec(shape, index_map, pipeline_mode=pl.Buffered(1))
    except TypeError:
        return pl.BlockSpec(shape, index_map)


def net_one_kernel(scal_ref,
                   text_ref, image_ref,
                   s1t_ref, h1t_ref, w1t_ref, s2t_ref, h2t_ref, w2t_ref,
                   s1i_ref, h1i_ref, w1i_ref, s2i_ref, h2i_ref, w2i_ref,
                   out_ref, *, compute_dtype):
    """One batch tile: 2x (BN->SiLU->Linear->BN->SiLU->Linear) + fused cosine."""
    cdt = compute_dtype

    def branch(x, s1, h1, w1, s2, h2, w2):
        # Folded BatchNorm1d affine -> SiLU -> Dropout(eval: identity), in the
        # chip's elementwise dtype (bf16 on v6e/v7x, f32 on v5e).
        y = _silu(x.astype(cdt) * s1 + h1)
        # Linear(F -> 4F, bias=False): bf16 operands on the MXU, f32 accumulation.
        y = jnp.dot(y.astype(jnp.bfloat16), w1, preferred_element_type=jnp.float32)
        # second BN -> SiLU -> Dropout(identity) -> Linear(4F -> F).
        y = _silu(y.astype(cdt) * s2 + h2)
        # Keep the f32 MXU accumulation for the norm / cosine math.
        return jnp.dot(y.astype(jnp.bfloat16), w2, preferred_element_type=jnp.float32)

    xt = branch(text_ref[...],
                s1t_ref[...], h1t_ref[...], w1t_ref[...],
                s2t_ref[...], h2t_ref[...], w2t_ref[...])
    xi = branch(image_ref[...],
                s1i_ref[...], h1i_ref[...], w1i_ref[...],
                s2i_ref[...], h2i_ref[...], w2i_ref[...])

    # Fused F.normalize(p=2, dim=-1, eps=1e-12) + cosine similarity:
    #   cos = <xt, xi> * rsqrt(max(|xt|^2, eps^2)) * rsqrt(max(|xi|^2, eps^2))
    dot = jnp.sum(xt * xi, axis=-1, keepdims=True)           # (TB, 1) f32
    nt = jnp.sum(xt * xt, axis=-1, keepdims=True)
    ni = jnp.sum(xi * xi, axis=-1, keepdims=True)
    cos = (dot
           * jax.lax.rsqrt(jnp.maximum(nt, 1e-24))
           * jax.lax.rsqrt(jnp.maximum(ni, 1e-24)))

    scale = scal_ref[0]                                       # exp(t_prime) * 100
    shift = scal_ref[1]                                       # b * 100

    # Per-tile output is only TB*4 bytes: a direct (TB, 1) store is cheaper
    # than any in-kernel transpose of the result column.
    out_ref[...] = (cos * scale + shift).astype(out_ref.dtype)


def net_one_forward(params, text, image, *,
                    tile_b=None, compute_dtype=None, core_parallel=None):
    B, F = text.shape
    H = params["w1t"].shape[1]

    kind = _device_kind()
    is_v7 = _is_v7(kind)
    if compute_dtype is None:
        compute_dtype = jnp.bfloat16 if _has_bf16_vpu(kind) else jnp.float32

    # --- batch tile selection -------------------------------------------------
    rb = -(-B // 8) * 8                       # round batch up to a sublane multiple
    if tile_b is None:
        cap = 128 if is_v7 else 256           # 64 MiB VMEM on v7x; 128 MiB on v5e/v6e
        tile_b = min(cap, rb)
        if is_v7 and rb > 8:                  # guarantee >=2 grid steps: feed both TCs
            half = (rb + 1) // 2
            half = -(-half // 8) * 8
            tile_b = min(tile_b, half)

    num_tiles = pl.cdiv(B, tile_b)
    Bp = num_tiles * tile_b
    if Bp != B:
        text = jnp.pad(text, ((0, Bp - B), (0, 0)))
        image = jnp.pad(image, ((0, Bp - B), (0, 0)))

    # bf16 streaming activations: halves the per-step HBM->VMEM DMA bytes.
    text = text.astype(jnp.bfloat16)
    image = image.astype(jnp.bfloat16)

    # bf16 weights (bf16-native MXU, half the resident VMEM); folded-BN affines
    # in the elementwise compute dtype.
    w1t = params["w1t"].astype(jnp.bfloat16)
    w2t = params["w2t"].astype(jnp.bfloat16)
    w1i = params["w1i"].astype(jnp.bfloat16)
    w2i = params["w2i"].astype(jnp.bfloat16)
    s1t = params["s1t"].astype(compute_dtype)
    h1t = params["h1t"].astype(compute_dtype)
    s2t = params["s2t"].astype(compute_dtype)
    h2t = params["h2t"].astype(compute_dtype)
    s1i = params["s1i"].astype(compute_dtype)
    h1i = params["h1i"].astype(compute_dtype)
    s2i = params["s2i"].astype(compute_dtype)
    h2i = params["h2i"].astype(compute_dtype)

    scal = jnp.array([jnp.exp(params["t_prime"]) * 100.0,
                      params["b"] * 100.0], dtype=jnp.float32)

    batch_map = lambda i, scal_ref: (i, 0)     # activations: tiled on batch
    const_map = lambda i, scal_ref: (0, 0)     # weights / BN affines: resident

    grid_spec = pltpu.PrefetchScalarGridSpec(
        num_scalar_prefetch=1,
        grid=(num_tiles,),
        in_specs=[
            pl.BlockSpec((tile_b, F), batch_map),   # text  (bf16)
            pl.BlockSpec((tile_b, F), batch_map),   # image (bf16)
            _const_spec((1, F), const_map),         # s1t
            _const_spec((1, F), const_map),         # h1t
            _const_spec((F, H), const_map),         # w1t
            _const_spec((1, H), const_map),         # s2t
            _const_spec((1, H), const_map),         # h2t
            _const_spec((H, F), const_map),         # w2t
            _const_spec((1, F), const_map),         # s1i
            _const_spec((1, F), const_map),         # h1i
            _const_spec((F, H), const_map),         # w1i
            _const_spec((1, H), const_map),         # s2i
            _const_spec((1, H), const_map),         # h2i
            _const_spec((H, F), const_map),         # w2i
        ],
        out_specs=pl.BlockSpec((tile_b, 1), lambda i, scal_ref: (i, 0)),
    )

    if core_parallel is None:
        core_parallel = is_v7 and num_tiles >= 2
    dim_sem = (pltpu.CORE_PARALLEL if core_parallel else pltpu.PARALLEL,)

    cost = pl.CostEstimate(
        flops=int(8 * Bp * F * H + 12 * Bp * (F + H)),
        transcendentals=int(2 * Bp * (F + H) + 2 * Bp),
        bytes_accessed=int(4 * F * H * 2            # bf16 weights
                           + 2 * Bp * F * 2         # bf16 activations in
                           + Bp * 4                 # output
                           + 4 * (F + H) * 2),      # folded-BN affines
    )

    out = pl.pallas_call(
        functools.partial(net_one_kernel, compute_dtype=compute_dtype),
        out_shape=jax.ShapeDtypeStruct((Bp, 1), jnp.float32),
        grid_spec=grid_spec,
        compiler_params=pltpu.CompilerParams(
            dimension_semantics=dim_sem,
            vmem_limit_bytes=32 * 1024 * 1024,
        ),
        cost_estimate=cost,
    )(scal, text, image,
      s1t, h1t, w1t, s2t, h2t, w2t,
      s1i, h1i, w1i, s2i, h2i, w2i)

    # torch: out.squeeze() -> (B,)
    return out[:B, 0]


def net_one_reference(params, text, image, *, compute_dtype=jnp.float32):
    """Pure-JAX reference mirroring the kernel's mixed-precision numerics."""
    cdt = compute_dtype

    def branch(x, s1, h1, w1, s2, h2, w2):
        x = x.astype(jnp.bfloat16)                  # wrapper streams bf16 activations
        y = _silu(x.astype(cdt) * s1.astype(cdt) + h1.astype(cdt))
        y = jnp.dot(y.astype(jnp.bfloat16), w1.astype(jnp.bfloat16),
                    preferred_element_type=jnp.float32)
        y = _silu(y.astype(cdt) * s2.astype(cdt) + h2.astype(cdt))
        return jnp.dot(y.astype(jnp.bfloat16), w2.astype(jnp.bfloat16),
                       preferred_element_type=jnp.float32)

    xt = branch(text, params["s1t"], params["h1t"], params["w1t"],
                params["s2t"], params["h2t"], params["w2t"])
    xi = branch(image, params["s1i"], params["h1i"], params["w1i"],
                params["s2i"], params["h2i"], params["w2i"])
    nt = jnp.maximum(jnp.linalg.norm(xt, axis=-1, keepdims=True), 1e-12)
    ni = jnp.maximum(jnp.linalg.norm(xi, axis=-1, keepdims=True), 1e-12)
    cos = jnp.sum((xi / ni) * (xt / nt), axis=-1)
    return (cos * jnp.exp(params["t_prime"]) + params["b"]) * 100.0


def init_params(key, F=128, expansion=4):
    H = F * expansion
    ks = jax.random.split(key, 20)

    def folded_bn(kg, kb, km, kv, n):
        gamma = 1.0 + 0.1 * jax.random.normal(kg, (n,), jnp.float32)
        beta = 0.1 * jax.random.normal(kb, (n,), jnp.float32)
        mean = 0.1 * jax.random.normal(km, (n,), jnp.float32)
        var = 1.0 + 0.1 * jax.random.uniform(kv, (n,), jnp.float32)
        scale = gamma * jax.lax.rsqrt(var + 1e-5)
        shift = beta - mean * scale
        return scale.reshape(1, n), shift.reshape(1, n)

    def linear(k, n_in, n_out):
        bound = 1.0 / jnp.sqrt(jnp.float32(n_in))
        return jax.random.uniform(k, (n_in, n_out), jnp.float32, -bound, bound)

    s1t, h1t = folded_bn(ks[0], ks[1], ks[2], ks[3], F)
    s2t, h2t = folded_bn(ks[4], ks[5], ks[6], ks[7], H)
    s1i, h1i = folded_bn(ks[8], ks[9], ks[10], ks[11], F)
    s2i, h2i = folded_bn(ks[12], ks[13], ks[14], ks[15], H)

    return {
        "s1t": s1t, "h1t": h1t, "w1t": linear(ks[16], F, H),
        "s2t": s2t, "h2t": h2t, "w2t": linear(ks[17], H, F),
        "s1i": s1i, "h1i": h1i, "w1i": linear(ks[18], F, H),
        "s2i": s2i, "h2i": h2i, "w2i": linear(ks[19], H, F),
        "t_prime": jnp.float32(jnp.log(5.0)),   # init_tau = log(5)
        "b": jnp.float32(0.0),                  # init_b = 0
    }


if __name__ == "__main__":
    B, F = 8, 128   # small demo (module default feature_size=512); hidden = 4*F = 512
    key = jax.random.PRNGKey(0)
    kp, kt, ki = jax.random.split(key, 3)

    params = init_params(kp, F=F)
    text = jax.random.normal(kt, (B, F), jnp.float32)
    image = jax.random.normal(ki, (B, F), jnp.float32)

    cdt = _default_compute_dtype()
    out = jax.block_until_ready(net_one_forward(params, text, image))
    ref = jax.block_until_ready(
        net_one_reference(params, text, image, compute_dtype=cdt))

    assert out.shape == (B,), out.shape
    assert jnp.allclose(out, ref, rtol=2e-3, atol=5e-2), (out, ref)
    print("KERNEL_OK")
</pallas_src>

<mosaic_0001>
module attributes {stable_mosaic.version = 11 : i64} {
  func.func @net_one_kernel(%arg0: i32, %arg1: memref<2xf32, #tpu.memory_space<smem>>, %arg2: memref<8x128xbf16, #tpu.memory_space<vmem>>, %arg3: memref<8x128xbf16, #tpu.memory_space<vmem>>, %arg4: memref<1x128xf32, #tpu.memory_space<vmem>>, %arg5: memref<1x128xf32, #tpu.memory_space<vmem>>, %arg6: memref<128x512xbf16, #tpu.memory_space<vmem>>, %arg7: memref<1x512xf32, #tpu.memory_space<vmem>>, %arg8: memref<1x512xf32, #tpu.memory_space<vmem>>, %arg9: memref<512x128xbf16, #tpu.memory_space<vmem>>, %arg10: memref<1x128xf32, #tpu.memory_space<vmem>>, %arg11: memref<1x128xf32, #tpu.memory_space<vmem>>, %arg12: memref<128x512xbf16, #tpu.memory_space<vmem>>, %arg13: memref<1x512xf32, #tpu.memory_space<vmem>>, %arg14: memref<1x512xf32, #tpu.memory_space<vmem>>, %arg15: memref<512x128xbf16, #tpu.memory_space<vmem>>, %arg16: memref<8x1xf32, #tpu.memory_space<vmem>>) attributes {dimension_semantics = [#tpu.dimension_semantics<parallel>], iteration_bounds = array<i64: 1>, scalar_prefetch = 1 : i64, scratch_operands = 0 : i64, tpu.core_type = #tpu.core_type<tc>, window_params = [{transform_indices = @transform_0, window_bounds = array<i64: 8, 128>}, {transform_indices = @transform_1, window_bounds = array<i64: 8, 128>}, {pipeline_mode = #tpu.pipeline_mode<synchronous>, transform_indices = @transform_2, window_bounds = array<i64: 1, 128>}, {pipeline_mode = #tpu.pipeline_mode<synchronous>, transform_indices = @transform_3, window_bounds = array<i64: 1, 128>}, {pipeline_mode = #tpu.pipeline_mode<synchronous>, transform_indices = @transform_4, window_bounds = array<i64: 128, 512>}, {pipeline_mode = #tpu.pipeline_mode<synchronous>, transform_indices = @transform_5, window_bounds = array<i64: 1, 512>}, {pipeline_mode = #tpu.pipeline_mode<synchronous>, transform_indices = @transform_6, window_bounds = array<i64: 1, 512>}, {pipeline_mode = #tpu.pipeline_mode<synchronous>, transform_indices = @transform_7, window_bounds = array<i64: 512, 128>}, {pipeline_mode = #tpu.pipeline_mode<synchronous>, transform_indices = @transform_8, window_bounds = array<i64: 1, 128>}, {pipeline_mode = #tpu.pipeline_mode<synchronous>, transform_indices = @transform_9, window_bounds = array<i64: 1, 128>}, {pipeline_mode = #tpu.pipeline_mode<synchronous>, transform_indices = @transform_10, window_bounds = array<i64: 128, 512>}, {pipeline_mode = #tpu.pipeline_mode<synchronous>, transform_indices = @transform_11, window_bounds = array<i64: 1, 512>}, {pipeline_mode = #tpu.pipeline_mode<synchronous>, transform_indices = @transform_12, window_bounds = array<i64: 1, 512>}, {pipeline_mode = #tpu.pipeline_mode<synchronous>, transform_indices = @transform_13, window_bounds = array<i64: 512, 128>}, {transform_indices = @transform_14, window_bounds = array<i64: 8, 1>}]} {
    %c0 = arith.constant 0 : index
    %c0_0 = arith.constant 0 : index
    %0 = vector.load %arg2[%c0, %c0_0] : memref<8x128xbf16, #tpu.memory_space<vmem>>, vector<8x128xbf16>
    %c0_1 = arith.constant 0 : index
    %c0_2 = arith.constant 0 : index
    %1 = vector.load %arg4[%c0_1, %c0_2] : memref<1x128xf32, #tpu.memory_space<vmem>>, vector<1x128xf32>
    %c0_3 = arith.constant 0 : index
    %c0_4 = arith.constant 0 : index
    %2 = vector.load %arg5[%c0_3, %c0_4] : memref<1x128xf32, #tpu.memory_space<vmem>>, vector<1x128xf32>
    %c0_5 = arith.constant 0 : index
    %c0_6 = arith.constant 0 : index
    %3 = vector.load %arg6[%c0_5, %c0_6] : memref<128x512xbf16, #tpu.memory_space<vmem>>, vector<128x512xbf16>
    %c0_7 = arith.constant 0 : index
    %c0_8 = arith.constant 0 : index
    %4 = vector.load %arg7[%c0_7, %c0_8] : memref<1x512xf32, #tpu.memory_space<vmem>>, vector<1x512xf32>
    %c0_9 = arith.constant 0 : index
    %c0_10 = arith.constant 0 : index
    %5 = vector.load %arg8[%c0_9, %c0_10] : memref<1x512xf32, #tpu.memory_space<vmem>>, vector<1x512xf32>
    %c0_11 = arith.constant 0 : index
    %c0_12 = arith.constant 0 : index
    %6 = vector.load %arg9[%c0_11, %c0_12] : memref<512x128xbf16, #tpu.memory_space<vmem>>, vector<512x128xbf16>
    %7 = arith.extf %0 : vector<8x128xbf16> to vector<8x128xf32>
    %8 = vector.broadcast %1 : vector<1x128xf32> to vector<8x128xf32>
    %9 = arith.mulf %7, %8 : vector<8x128xf32>
    %10 = vector.broadcast %2 : vector<1x128xf32> to vector<8x128xf32>
    %11 = arith.addf %9, %10 : vector<8x128xf32>
    %12 = arith.negf %11 : vector<8x128xf32>
    %13 = math.exp %12 : vector<8x128xf32>
    %cst = arith.constant 1.000000e+00 : f32
    %14 = vector.broadcast %cst : f32 to vector<8x128xf32>
    %15 = arith.addf %14, %13 : vector<8x128xf32>
    %16 = arith.divf %14, %15 : vector<8x128xf32>
    %17 = arith.mulf %11, %16 : vector<8x128xf32>
    %18 = arith.truncf %17 : vector<8x128xf32> to vector<8x128xbf16>
    %cst_13 = arith.constant dense<0.000000e+00> : vector<8x512xf32>
    %19 = tpu.matmul %18, %3, %cst_13 {dimension_numbers = #tpu.dot_dimension_numbers<[1], [0], [0], [1], [0, 0, 1, 1], [], []>} : vector<8x128xbf16>, vector<128x512xbf16>, vector<8x512xf32> -> vector<8x512xf32>
    %20 = vector.broadcast %4 : vector<1x512xf32> to vector<8x512xf32>
    %21 = arith.mulf %19, %20 : vector<8x512xf32>
    %22 = vector.broadcast %5 : vector<1x512xf32> to vector<8x512xf32>
    %23 = arith.addf %21, %22 : vector<8x512xf32>
    %24 = arith.negf %23 : vector<8x512xf32>
    %25 = math.exp %24 : vector<8x512xf32>
    %cst_14 = arith.constant 1.000000e+00 : f32
    %26 = vector.broadcast %cst_14 : f32 to vector<8x512xf32>
    %27 = arith.addf %26, %25 : vector<8x512xf32>
    %28 = arith.divf %26, %27 : vector<8x512xf32>
    %29 = arith.mulf %23, %28 : vector<8x512xf32>
    %30 = arith.truncf %29 : vector<8x512xf32> to vector<8x512xbf16>
    %cst_15 = arith.constant dense<0.000000e+00> : vector<8x128xf32>
    %31 = tpu.matmul %30, %6, %cst_15 {dimension_numbers = #tpu.dot_dimension_numbers<[1], [0], [0], [1], [0, 0, 1, 1], [], []>} : vector<8x512xbf16>, vector<512x128xbf16>, vector<8x128xf32> -> vector<8x128xf32>
    %c0_16 = arith.constant 0 : index
    %c0_17 = arith.constant 0 : index
    %32 = vector.load %arg3[%c0_16, %c0_17] : memref<8x128xbf16, #tpu.memory_space<vmem>>, vector<8x128xbf16>
    %c0_18 = arith.constant 0 : index
    %c0_19 = arith.constant 0 : index
    %33 = vector.load %arg10[%c0_18, %c0_19] : memref<1x128xf32, #tpu.memory_space<vmem>>, vector<1x128xf32>
    %c0_20 = arith.constant 0 : index
    %c0_21 = arith.constant 0 : index
    %34 = vector.load %arg11[%c0_20, %c0_21] : memref<1x128xf32, #tpu.memory_space<vmem>>, vector<1x128xf32>
    %c0_22 = arith.constant 0 : index
    %c0_23 = arith.constant 0 : index
    %35 = vector.load %arg12[%c0_22, %c0_23] : memref<128x512xbf16, #tpu.memory_space<vmem>>, vector<128x512xbf16>
    %c0_24 = arith.constant 0 : index
    %c0_25 = arith.constant 0 : index
    %36 = vector.load %arg13[%c0_24, %c0_25] : memref<1x512xf32, #tpu.memory_space<vmem>>, vector<1x512xf32>
    %c0_26 = arith.constant 0 : index
    %c0_27 = arith.constant 0 : index
    %37 = vector.load %arg14[%c0_26, %c0_27] : memref<1x512xf32, #tpu.memory_space<vmem>>, vector<1x512xf32>
    %c0_28 = arith.constant 0 : index
    %c0_29 = arith.constant 0 : index
    %38 = vector.load %arg15[%c0_28, %c0_29] : memref<512x128xbf16, #tpu.memory_space<vmem>>, vector<512x128xbf16>
    %39 = arith.extf %32 : vector<8x128xbf16> to vector<8x128xf32>
    %40 = vector.broadcast %33 : vector<1x128xf32> to vector<8x128xf32>
    %41 = arith.mulf %39, %40 : vector<8x128xf32>
    %42 = vector.broadcast %34 : vector<1x128xf32> to vector<8x128xf32>
    %43 = arith.addf %41, %42 : vector<8x128xf32>
    %44 = arith.negf %43 : vector<8x128xf32>
    %45 = math.exp %44 : vector<8x128xf32>
    %cst_30 = arith.constant 1.000000e+00 : f32
    %46 = vector.broadcast %cst_30 : f32 to vector<8x128xf32>
    %47 = arith.addf %46, %45 : vector<8x128xf32>
    %48 = arith.divf %46, %47 : vector<8x128xf32>
    %49 = arith.mulf %43, %48 : vector<8x128xf32>
    %50 = arith.truncf %49 : vector<8x128xf32> to vector<8x128xbf16>
    %cst_31 = arith.constant dense<0.000000e+00> : vector<8x512xf32>
    %51 = tpu.matmul %50, %35, %cst_31 {dimension_numbers = #tpu.dot_dimension_numbers<[1], [0], [0], [1], [0, 0, 1, 1], [], []>} : vector<8x128xbf16>, vector<128x512xbf16>, vector<8x512xf32> -> vector<8x512xf32>
    %52 = vector.broadcast %36 : vector<1x512xf32> to vector<8x512xf32>
    %53 = arith.mulf %51, %52 : vector<8x512xf32>
    %54 = vector.broadcast %37 : vector<1x512xf32> to vector<8x512xf32>
    %55 = arith.addf %53, %54 : vector<8x512xf32>
    %56 = arith.negf %55 : vector<8x512xf32>
    %57 = math.exp %56 : vector<8x512xf32>
    %cst_32 = arith.constant 1.000000e+00 : f32
    %58 = vector.broadcast %cst_32 : f32 to vector<8x512xf32>
    %59 = arith.addf %58, %57 : vector<8x512xf32>
    %60 = arith.divf %58, %59 : vector<8x512xf32>
    %61 = arith.mulf %55, %60 : vector<8x512xf32>
    %62 = arith.truncf %61 : vector<8x512xf32> to vector<8x512xbf16>
    %cst_33 = arith.constant dense<0.000000e+00> : vector<8x128xf32>
    %63 = tpu.matmul %62, %38, %cst_33 {dimension_numbers = #tpu.dot_dimension_numbers<[1], [0], [0], [1], [0, 0, 1, 1], [], []>} : vector<8x512xbf16>, vector<512x128xbf16>, vector<8x128xf32> -> vector<8x128xf32>
    %64 = arith.mulf %31, %63 : vector<8x128xf32>
    %cst_34 = arith.constant dense<0.000000e+00> : vector<8xf32>
    %65 = vector.multi_reduction <add>, %64, %cst_34 [1] : vector<8x128xf32> to vector<8xf32>
    %66 = vector.shape_cast %65 : vector<8xf32> to vector<8x1xf32>
    %67 = arith.mulf %31, %31 : vector<8x128xf32>
    %cst_35 = arith.constant dense<0.000000e+00> : vector<8xf32>
    %68 = vector.multi_reduction <add>, %67, %cst_35 [1] : vector<8x128xf32> to vector<8xf32>
    %69 = vector.shape_cast %68 : vector<8xf32> to vector<8x1xf32>
    %70 = arith.mulf %63, %63 : vector<8x128xf32>
    %cst_36 = arith.constant dense<0.000000e+00> : vector<8xf32>
    %71 = vector.multi_reduction <add>, %70, %cst_36 [1] : vector<8x128xf32> to vector<8xf32>
    %72 = vector.shape_cast %71 : vector<8xf32> to vector<8x1xf32>
    %cst_37 = arith.constant 1.000000e-24 : f32
    %73 = vector.broadcast %cst_37 : f32 to vector<8x1xf32>
    %74 = arith.maximumf %69, %73 : vector<8x1xf32>
    %75 = math.rsqrt %74 : vector<8x1xf32>
    %76 = arith.mulf %66, %75 : vector<8x1xf32>
    %cst_38 = arith.constant 1.000000e-24 : f32
    %77 = vector.broadcast %cst_38 : f32 to vector<8x1xf32>
    %78 = arith.maximumf %72, %77 : vector<8x1xf32>
    %79 = math.rsqrt %78 : vector<8x1xf32>
    %80 = arith.mulf %76, %79 : vector<8x1xf32>
    %c0_39 = arith.constant 0 : index
    %81 = memref.load %arg1[%c0_39] : memref<2xf32, #tpu.memory_space<smem>>
    %c1 = arith.constant 1 : index
    %82 = memref.load %arg1[%c1] : memref<2xf32, #tpu.memory_space<smem>>
    %83 = vector.broadcast %81 : f32 to vector<8x1xf32>
    %84 = arith.mulf %80, %83 : vector<8x1xf32>
    %85 = vector.broadcast %82 : f32 to vector<8x1xf32>
    %86 = arith.addf %84, %85 : vector<8x1xf32>
    %c0_40 = arith.constant 0 : index
    %c0_41 = arith.constant 0 : index
    %87 = vector.load %arg16[%c0_40, %c0_41] : memref<8x1xf32, #tpu.memory_space<vmem>>, vector<8x1xf32>
    tpu.vector_store %arg16[%c0_40, %c0_41], %86 {strides = array<i32>} : memref<8x1xf32, #tpu.memory_space<vmem>>, vector<8x1xf32>,
    return
  }
  func.func @transform_0(%arg0: i32, %arg1: memref<2xf32, #tpu.memory_space<smem>>) -> (i32, i32) {
    %c0_i32 = arith.constant 0 : i32
    %c0_i32_0 = arith.constant 0 : i32
    return %arg0, %c0_i32 : i32, i32
  }
  func.func @transform_1(%arg0: i32, %arg1: memref<2xf32, #tpu.memory_space<smem>>) -> (i32, i32) {
    %c0_i32 = arith.constant 0 : i32
    %c0_i32_0 = arith.constant 0 : i32
    return %arg0, %c0_i32 : i32, i32
  }
  func.func @transform_2(%arg0: i32, %arg1: memref<2xf32, #tpu.memory_space<smem>>) -> (i32, i32) {
    %c0_i32 = arith.constant 0 : i32
    %c0_i32_0 = arith.constant 0 : i32
    %c0_i32_1 = arith.constant 0 : i32
    return %c0_i32, %c0_i32_0 : i32, i32
  }
  func.func @transform_3(%arg0: i32, %arg1: memref<2xf32, #tpu.memory_space<smem>>) -> (i32, i32) {
    %c0_i32 = arith.constant 0 : i32
    %c0_i32_0 = arith.constant 0 : i32
    %c0_i32_1 = arith.constant 0 : i32
    return %c0_i32, %c0_i32_0 : i32, i32
  }
  func.func @transform_4(%arg0: i32, %arg1: memref<2xf32, #tpu.memory_space<smem>>) -> (i32, i32) {
    %c0_i32 = arith.constant 0 : i32
    %c0_i32_0 = arith.constant 0 : i32
    %c0_i32_1 = arith.constant 0 : i32
    return %c0_i32, %c0_i32_0 : i32, i32
  }
  func.func @transform_5(%arg0: i32, %arg1: memref<2xf32, #tpu.memory_space<smem>>) -> (i32, i32) {
    %c0_i32 = arith.constant 0 : i32
    %c0_i32_0 = arith.constant 0 : i32
    %c0_i32_1 = arith.constant 0 : i32
    return %c0_i32, %c0_i32_0 : i32, i32
  }
  func.func @transform_6(%arg0: i32, %arg1: memref<2xf32, #tpu.memory_space<smem>>) -> (i32, i32) {
    %c0_i32 = arith.constant 0 : i32
    %c0_i32_0 = arith.constant 0 : i32
    %c0_i32_1 = arith.constant 0 : i32
    return %c0_i32, %c0_i32_0 : i32, i32
  }
  func.func @transform_7(%arg0: i32, %arg1: memref<2xf32, #tpu.memory_space<smem>>) -> (i32, i32) {
    %c0_i32 = arith.constant 0 : i32
    %c0_i32_0 = arith.constant 0 : i32
    %c0_i32_1 = arith.constant 0 : i32
    return %c0_i32, %c0_i32_0 : i32, i32
  }
  func.func @transform_8(%arg0: i32, %arg1: memref<2xf32, #tpu.memory_space<smem>>) -> (i32, i32) {
    %c0_i32 = arith.constant 0 : i32
    %c0_i32_0 = arith.constant 0 : i32
    %c0_i32_1 = arith.constant 0 : i32
    return %c0_i32, %c0_i32_0 : i32, i32
  }
  func.func @transform_9(%arg0: i32, %arg1: memref<2xf32, #tpu.memory_space<smem>>) -> (i32, i32) {
    %c0_i32 = arith.constant 0 : i32
    %c0_i32_0 = arith.constant 0 : i32
    %c0_i32_1 = arith.constant 0 : i32
    return %c0_i32, %c0_i32_0 : i32, i32
  }
  func.func @transform_10(%arg0: i32, %arg1: memref<2xf32, #tpu.memory_space<smem>>) -> (i32, i32) {
    %c0_i32 = arith.constant 0 : i32
    %c0_i32_0 = arith.constant 0 : i32
    %c0_i32_1 = arith.constant 0 : i32
    return %c0_i32, %c0_i32_0 : i32, i32
  }
  func.func @transform_11(%arg0: i32, %arg1: memref<2xf32, #tpu.memory_space<smem>>) -> (i32, i32) {
    %c0_i32 = arith.constant 0 : i32
    %c0_i32_0 = arith.constant 0 : i32
    %c0_i32_1 = arith.constant 0 : i32
    return %c0_i32, %c0_i32_0 : i32, i32
  }
  func.func @transform_12(%arg0: i32, %arg1: memref<2xf32, #tpu.memory_space<smem>>) -> (i32, i32) {
    %c0_i32 = arith.constant 0 : i32
    %c0_i32_0 = arith.constant 0 : i32
    %c0_i32_1 = arith.constant 0 : i32
    return %c0_i32, %c0_i32_0 : i32, i32
  }
  func.func @transform_13(%arg0: i32, %arg1: memref<2xf32, #tpu.memory_space<smem>>) -> (i32, i32) {
    %c0_i32 = arith.constant 0 : i32
    %c0_i32_0 = arith.constant 0 : i32
    %c0_i32_1 = arith.constant 0 : i32
    return %c0_i32, %c0_i32_0 : i32, i32
  }
  func.func @transform_14(%arg0: i32, %arg1: memref<2xf32, #tpu.memory_space<smem>>) -> (i32, i32) {
    %c0_i32 = arith.constant 0 : i32
    %c0_i32_0 = arith.constant 0 : i32
    return %arg0, %c0_i32 : i32, i32
  }
}

</mosaic_0001>

<bundles_post_ra>
// kernel: tpu_custom_call.1
= control target key start
LH: loop header
LB: loop body
LE: loop exit
PB: predicated region body
PF: predicated region fallthrough
CT: control target
= control target key end

     0   :  { %s2393_s0 = inlined_call_operand.hbm [shape: f32[2], index: 0, kind: input, shape index: {}]   ;;  %s2394_s1 = inlined_call_operand.hbm [shape: bf16[8,128], index: 1, kind: input, shape index: {}]   ;;  %s2395_s2 = inlined_call_operand.vmem [shape: bf16[8,128], index: 2, kind: input, shape index: {}]   ;;  %s2396_s3 = inlined_call_operand.vmem [shape: f32[1,128], index: 3, kind: input, shape index: {}]   ;;  %s2397_s4 = inlined_call_operand.vmem [shape: f32[1,128], index: 4, kind: input, shape index: {}]   ;;  %s2398_s5 = inlined_call_operand.hbm [shape: bf16[128,512], index: 5, kind: input, shape index: {}]   ;;  %s2399_s6 = inlined_call_operand.vmem [shape: f32[1,512], index: 6, kind: input, shape index: {}]   ;;  %s2400_s7 = inlined_call_operand.vmem [shape: f32[1,512], index: 7, kind: input, shape index: {}]   ;;  %s2401_s8 = inlined_call_operand.hbm [shape: bf16[512,128], index: 8, kind: input, shape index: {}]   ;;  %s2402_s9 = inlined_call_operand.vmem [shape: f32[1,128], index: 9, kind: input, shape index: {}]   ;;  %s2403_s10 = inlined_call_operand.vmem [shape: f32[1,128], index: 10, kind: input, shape index: {}]   ;;  %s2404_s11 = inlined_call_operand.hbm [shape: bf16[128,512], index: 11, kind: input, shape index: {}]   ;;  %s2405_s12 = inlined_call_operand.vmem [shape: f32[1,512], index: 12, kind: input, shape index: {}]   ;;  %s2406_s13 = inlined_call_operand.vmem [shape: f32[1,512], index: 13, kind: input, shape index: {}]   ;;  %s2407_s14 = inlined_call_operand.hbm [shape: bf16[512,128], index: 14, kind: input, shape index: {}]   ;;  %s2408_s15 = inlined_call_operand.vmem [shape: f32[8,1], index: 15, kind: output, shape index: {}]  }
   0x1   :  { %s2035_s20 = scalar_lea.hbm %s2393_s0, 16 }
   0x2   :  { %p2036_p0 = scmp.ne.s32.totalorder %s2393_s0, %s2035_s20  ;;  %p2039_p1 = scmp.lt.u32.totalorder %s2035_s20, %s2393_s0 }
   0x4   :  { %p2041_p2 = pnand %p2039_p1, %p2036_p0 }
   0x6   :  { %2044 = shalt.err (!%p2041_p2)  }
   0x7   :  { %s2163_s25 = smov [#allocation3]  }
   0x8   :  { %21 = dma.hbm_to_smem %s2393_s0, 16, %s2163_s25, [#allocation2] }
   0x9   :  { %2155 = dma.done.wait [#allocation2], 16 }
   0xa   :  { %2156 = vsyncadd [#allocation2], 4294967280 }
   0xb   :  { %23 = sfence }
   0xc   :  { %24 = vsyncpa [#allocation5], 0 }
   0xd   :  { %25 = vsyncpa [#allocation7], 0 }
   0xe   :  { %26 = vsyncpa [#allocation10], 0  ;;  %s2164_s28 = smov [#allocation6]   ;;  %s2045_s17 = scalar_lea.hbm %s2398_s5, 4096 }
   0xf   :  { %s48_s29 = sshll.u32 %s2164_s28, 4  ;;  %p2046_p3 = scmp.ne.s32.totalorder %s2398_s5, %s2045_s17  ;;  %s49_s29 = int_to_ptr.vmem [resolvable:$true] %s48_s29 }
  0x10   :  { %p2049_p4 = scmp.lt.u32.totalorder %s2045_s17, %s2398_s5 }
  0x12   :  { %p2051_p5 = pnand %p2049_p4, %p2046_p3 }
  0x14   :  { %2054 = shalt.err (!%p2051_p5)
}
  0x15   :  { %s2055_s0 = scalar_lea.vmem %s49_s29, 4096  ;;  %p2060_p7 = scmp.lt.s32.totalorder %s49_s29, %s49_s29 }
  0x16   :  { %p2056_p6 = scmp.ne.s32.totalorder %s49_s29, %s2055_s0  ;;  %p2061_p8 = scmp.lt.s32.totalorder %s2055_s0, %s2055_s0 }
  0x18   :  { %p2062_p9 = por %p2061_p8, %p2060_p7 }
  0x1a   :  { %p2063_p10 = pnand %p2062_p9, %p2056_p6 }
  0x1c   :  { %2066 = shalt.err (!%p2063_p10)
}
  0x1d   :  { %s2165_s22 = smov 256   ;;  %s2166_s23 = smov 16  }
  0x1e   :  { %54 = dma.hbm_to_vmem [thread:$0]  %s2398_s5, 4096, %s49_s29, [#allocation7], %s2165_s22, %s2165_s22, %s2166_s23  }
  0x1f   :  { %s2167_s26 = smov [#allocation9]   ;;  %s2168_s28 = smov [#allocation4]  }
  0x20   :  { %s80_s27 = sshll.u32 %s2167_s26, 4  ;;  %s33_s30 = sshll.u32 %s2168_s28, 4  ;;  %s81_s27 = int_to_ptr.vmem [resolvable:$true] %s80_s27  ;;  %s34_s30 = int_to_ptr.vmem [resolvable:$true] %s33_s30 }
  0x21   :  { %s2067_s18 = scalar_lea.hbm %s2404_s11, 4096 }
  0x22   :  { %p2068_p11 = scmp.ne.s32.totalorder %s2404_s11, %s2067_s18  ;;  %p2071_p12 = scmp.lt.u32.totalorder %s2067_s18, %s2404_s11 }
  0x24   :  { %p2073_p13 = pnand %p2071_p12, %p2068_p11 }
  0x26   :  { %2076 = shalt.err (!%p2073_p13)
}
  0x27   :  { %s2077_s5 = scalar_lea.vmem %s81_s27, 4096  ;;  %p2082_p1 = scmp.lt.s32.totalorder %s81_s27, %s81_s27 }
  0x28   :  { %p2078_p0 = scmp.ne.s32.totalorder %s81_s27, %s2077_s5  ;;  %p2083_p2 = scmp.lt.s32.totalorder %s2077_s5, %s2077_s5 }
  0x2a   :  { %p2084_p3 = por %p2083_p2, %p2082_p1 }
  0x2c   :  { %p2085_p4 = pnand %p2084_p3, %p2078_p0 }
  0x2e   :  { %2088 = shalt.err (!%p2085_p4)
}
  0x2f   :  { %86 = dma.hbm_to_vmem [thread:$0]  %s2404_s11, 4096, %s81_s27, [#allocation10], %s2165_s22, %s2165_s22, %s2166_s23  }
  0x30   :  { %s2089_s28 = scalar_lea.hbm %s2394_s1, 64 }
  0x31   :  { %p2090_p5 = scmp.ne.s32.totalorder %s2394_s1, %s2089_s28  ;;  %p2093_p6 = scmp.lt.u32.totalorder %s2089_s28, %s2394_s1 }
  0x33   :  { %p2095_p7 = pnand %p2093_p6, %p2090_p5 }
  0x35   :  { %2098 = shalt.err (!%p2095_p7)
}
  0x36   :  { %s2099_s20 = scalar_lea.vmem %s34_s30, 64  ;;  %p2104_p9 = scmp.lt.s32.totalorder %s34_s30, %s34_s30 }
  0x37   :  { %p2100_p8 = scmp.ne.s32.totalorder %s34_s30, %s2099_s20  ;;  %p2105_p10 = scmp.lt.s32.totalorder %s2099_s20, %s2099_s20 }
  0x39   :  { %p2106_p11 = por %p2105_p10, %p2104_p9 }
  0x3b   :  { %p2107_p12 = pnand %p2106_p11, %p2100_p8 }
  0x3d   :  { %2110 = shalt.err (!%p2107_p12)
}
  0x3e   :  { %36 = dma.hbm_to_vmem [thread:$0]  %s2394_s1, 64, %s34_s30, [#allocation5]  }
  0x3f   :  { %s2169_s23 = smov [#allocation8]   ;;  %s2111_s5 = scalar_lea.hbm %s2401_s8, 4096 }
  0x40   :  { %s64_s27 = sshll.u32 %s2169_s23, 4  ;;  %p2112_p13 = scmp.ne.s32.totalorder %s2401_s8, %s2111_s5  ;;  %s65_s27 = int_to_ptr.vmem [resolvable:$true] %s64_s27 }
  0x41   :  { %p2115_p0 = scmp.lt.u32.totalorder %s2111_s5, %s2401_s8 }
  0x43   :  { %p2117_p1 = pnand %p2115_p0, %p2112_p13 }
  0x45   :  { %2120 = shalt.err (!%p2117_p1)
}
  0x46   :  { %s2121_s28 = scalar_lea.vmem %s65_s27, 4096  ;;  %p2126_p3 = scmp.lt.s32.totalorder %s65_s27, %s65_s27 }
  0x47   :  { %p2122_p2 = scmp.ne.s32.totalorder %s65_s27, %s2121_s28  ;;  %p2127_p4 = scmp.lt.s32.totalorder %s2121_s28, %s2121_s28 }
  0x49   :  { %p2128_p5 = por %p2127_p4, %p2126_p3 }
  0x4b   :  { %p2129_p6 = pnand %p2128_p5, %p2122_p2 }
  0x4d   :  { %2132 = shalt.err (!%p2129_p6)
}
  0x4e   :  { %s2170_s1 = smov 64   ;;  %s2171_s30 = smov 4  }
  0x4f   :  { %70 = dma.hbm_to_vmem [thread:$0]  %s2401_s8, 4096, %s65_s27, [#allocation7], %s2170_s1, %s2170_s1, %s2171_s30  }
  0x50   :  { %s2172_s18 = smov [#allocation11]   ;;  %s2133_s22 = scalar_lea.hbm %s2407_s14, 4096 }
  0x51   :  { %s96_s19 = sshll.u32 %s2172_s18, 4  ;;  %p2134_p7 = scmp.ne.s32.totalorder %s2407_s14, %s2133_s22  ;;  %s97_s19 = int_to_ptr.vmem [resolvable:$true] %s96_s19 }
  0x52   :  { %p2137_p8 = scmp.lt.u32.totalorder %s2133_s22, %s2407_s14 }
  0x54   :  { %p2139_p9 = pnand %p2137_p8, %p2134_p7 }
  0x56   :  { %2142 = shalt.err (!%p2139_p9)
}
  0x57   :  { %s2143_s29 = scalar_lea.vmem %s97_s19, 4096  ;;  %p2148_p11 = scmp.lt.s32.totalorder %s97_s19, %s97_s19 }
  0x58   :  { %p2144_p10 = scmp.ne.s32.totalorder %s97_s19, %s2143_s29  ;;  %p2149_p12 = scmp.lt.s32.totalorder %s2143_s29, %s2143_s29 }
  0x5a   :  { %p2150_p13 = por %p2149_p12, %p2148_p11 }
  0x5c   :  { %p2151_p0 = pnand %p2150_p13, %p2144_p10 }
  0x5e   :  { %2154 = shalt.err (!%p2151_p0)
}
  0x5f   :  { %102 = dma.hbm_to_vmem [thread:$0]  %s2407_s14, 4096, %s97_s19, [#allocation10], %s2170_s1, %s2170_s1, %s2171_s30  }
  0x60   :  { %2157 = dma.done.wait [#allocation5], 64  }
  0x61   :  { %2158 = vsyncadd [#allocation5], 4294967232 }
  0x62   :  { %2159 = dma.done.wait [#allocation7], 8192  }
  0x63   :  { %2160 = vsyncadd [#allocation7], 4294959104 }
  0x64   :  { %2161 = dma.done.wait [#allocation10], 8192  }
  0x65   :  { %2162 = vsyncadd [#allocation10], 4294959104  ;;  %v2173_v0 = vmov 0   ;;  %v1831_v1 = vld [vmem:[#allocation6 + $0x4] ss:$16 sps:$4 sm:$0xff]   ;;  %v1883_v49 = vld [vmem:[#allocation8 + $0x48] sm:$0xff]  }
  0x66   :  { %435 = vmatprep.mubr.bf16.mxu0 %v2173_v0  ;;  %476 = vmatprep.mubr.bf16.mxu1 %v2173_v0  ;;  %v1833_v2 = vld [vmem:[#allocation6 + $0xc] ss:$16 sps:$4 sm:$0xff]   ;;  %v1835_v3 = vld [vmem:[#allocation6] ss:$16 sps:$4 sm:$0xff]   ;;  %v1836_v4 = vld [vmem:[#allocation6 + $0x8] ss:$16 sps:$4 sm:$0xff]  }
  0x67   :  { %403 = vmatprep.subr.bf16.mxu0 %v1831_v1  ;;  %444 = vmatprep.subr.bf16.mxu1 %v1833_v2  ;;  %v1837_v5 = vld [vmem:[#allocation6 + $0x24] ss:$16 sps:$4 sm:$0xff]   ;;  %v1839_v6 = vld [vmem:[#allocation6 + $0x2c] ss:$16 sps:$4 sm:$0xff]   ;;  %v1841_v7 = vld [vmem:[#allocation6 + $0x20] ss:$16 sps:$4 sm:$0xff]  }
  0x68   :  { %404 = vmatpush1.bf16.msra.mxu0 %v1835_v3  ;;  %445 = vmatpush1.bf16.msra.mxu1 %v1836_v4  ;;  %v1842_v8 = vld [vmem:[#allocation6 + $0x28] ss:$16 sps:$4 sm:$0xff]   ;;  %v1843_v9 = vld [vmem:[#allocation6 + $0x44] ss:$16 sps:$4 sm:$0xff]   ;;  %v1845_v10 = vld [vmem:[#allocation6 + $0x4c] ss:$16 sps:$4 sm:$0xff]  }
  0x69   :  { %405 = vmatprep.subr.bf16.mxu0 %v1837_v5  ;;  %446 = vmatprep.subr.bf16.mxu1 %v1839_v6  ;;  %v1847_v11 = vld [vmem:[#allocation6 + $0x40] ss:$16 sps:$4 sm:$0xff]   ;;  %v1848_v12 = vld [vmem:[#allocation6 + $0x48] ss:$16 sps:$4 sm:$0xff]   ;;  %v1849_v13 = vld [vmem:[#allocation6 + $0x64] ss:$16 sps:$4 sm:$0xff]  }
  0x6a   :  { %v1851_v14 = vld [vmem:[#allocation6 + $0x6c] ss:$16 sps:$4 sm:$0xff]   ;;  %v1853_v15 = vld [vmem:[#allocation6 + $0x60] ss:$16 sps:$4 sm:$0xff]   ;;  %v1854_v16 = vld [vmem:[#allocation6 + $0x68] ss:$16 sps:$4 sm:$0xff]  }
  0x6b   :  { %v1855_v17 = vld [vmem:[#allocation6 + $0x84] ss:$16 sps:$4 sm:$0xff]   ;;  %v1857_v18 = vld [vmem:[#allocation6 + $0x8c] ss:$16 sps:$4 sm:$0xff]   ;;  %v1859_v19 = vld [vmem:[#allocation6 + $0x80] ss:$16 sps:$4 sm:$0xff]  }
  0x6c   :  { %406 = vmatpush1.bf16.msra.mxu0 %v1841_v7  ;;  %447 = vmatpush1.bf16.msra.mxu1 %v1842_v8  ;;  %v1860_v20 = vld [vmem:[#allocation6 + $0x88] ss:$16 sps:$4 sm:$0xff]   ;;  %v1861_v21 = vld [vmem:[#allocation6 + $0xa4] ss:$16 sps:$4 sm:$0xff]   ;;  %v1863_v22 = vld [vmem:[#allocation6 + $0xac] ss:$16 sps:$4 sm:$0xff]  }
  0x6d   :  { %407 = vmatprep.subr.bf16.mxu0 %v1843_v9  ;;  %448 = vmatprep.subr.bf16.mxu1 %v1845_v10  ;;  %v1865_v23 = vld [vmem:[#allocation6 + $0xa0] ss:$16 sps:$4 sm:$0xff]   ;;  %v1866_v24 = vld [vmem:[#allocation6 + $0xa8] ss:$16 sps:$4 sm:$0xff]   ;;  %v1867_v25 = vld [vmem:[#allocation6 + $0xc4] ss:$16 sps:$4 sm:$0xff]  }
  0x6e   :  { %v1869_v26 = vld [vmem:[#allocation6 + $0xcc] ss:$16 sps:$4 sm:$0xff]   ;;  %v1589_v28 = vld [vmem:[%s2396_s3] ss:$0 sm:$0xff]  ;;  %v1871_v29 = vld [vmem:[#allocation6 + $0xc0] ss:$16 sps:$4 sm:$0xff]  }
  0x6f   :  { %v119_v27 = vld [vmem:[#allocation4] sm:$0xf]  ;;  %v1872_v30 = vld [vmem:[#allocation6 + $0xc8] ss:$16 sps:$4 sm:$0xff]   ;;  %v1590_v31 = vld [vmem:[%s2397_s4] ss:$0 sm:$0xff] }
  0x70   :  { %408 = vmatpush1.bf16.msra.mxu0 %v1847_v11  ;;  %449 = vmatpush1.bf16.msra.mxu1 %v1848_v12  ;;  %v220_v32 = vunpack.c.l.bf16 %v119_v27  ;;  %v1873_v33 = vld [vmem:[#allocation6 + $0xe4] ss:$16 sps:$4 sm:$0xff]   ;;  %v1875_v34 = vld [vmem:[#allocation6 + $0xec] ss:$16 sps:$4 sm:$0xff]   ;;  %v1877_v36 = vld [vmem:[#allocation6 + $0xe0] ss:$16 sps:$4 sm:$0xff]  }
  0x71   :  { %409 = vmatprep.subr.bf16.mxu0 %v1849_v13  ;;  %450 = vmatprep.subr.bf16.mxu1 %v1851_v14  ;;  %v1878_v37 = vld [vmem:[#allocation6 + $0xe8] ss:$16 sps:$4 sm:$0xff]   ;;  %v1879_v45 = vld [vmem:[#allocation8 + $0x40] sm:$0xff]   ;;  %v1887_v53 = vld [vmem:[#allocation8 + $0x50] sm:$0xff]   ;;  %vm1580_vm0 = vcmask 7168  }
  0x72   :  { %v227_v35 = vmul.f32 %v1589_v28, %v220_v32  ;;  %v1880_v46 = vld [vmem:[#allocation8 + $0xc0] sm:$0xff]   ;;  %v1884_v50 = vld [vmem:[#allocation8 + $0xc8] sm:$0xff]   ;;  %v1888_v54 = vld [vmem:[#allocation8 + $0xd0] sm:$0xff]  }
  0x73   :  { %v1881_v47 = vld [vmem:[#allocation8] sm:$0xff]   ;;  %v1885_v51 = vld [vmem:[#allocation8 + $0x8] sm:$0xff]   ;;  %v1889_v55 = vld [vmem:[#allocation8 + $0x10] sm:$0xff]  }
  0x74   :  { %410 = vmatpush1.bf16.msra.mxu0 %v1853_v15  ;;  %451 = vmatpush1.bf16.msra.mxu1 %v1854_v16  ;;  %v234_v38 = vadd.f32 %v1590_v31, %v227_v35  ;;  %v1882_v48 = vld [vmem:[#allocation8 + $0x80] sm:$0xff]   ;;  %v1886_v52 = vld [vmem:[#allocation8 + $0x88] sm:$0xff]   ;;  %v1890_v56 = vld [vmem:[#allocation8 + $0x90] sm:$0xff]   ;;  %v486_v16 = vlaneseq }
  0x75   :  { %411 = vmatprep.subr.bf16.mxu0 %v1855_v17  ;;  %452 = vmatprep.subr.bf16.mxu1 %v1857_v18  ;;  %v1891_v57 = vld [vmem:[#allocation8 + $0x58] sm:$0xff]   ;;  %v1895_v61 = vld [vmem:[#allocation8 + $0x60] sm:$0xff]   ;;  %v1899_v2 = vld [vmem:[#allocation8 + $0x68] sm:$0xff]  }
  0x76   :  { %v1591_v39 = vmul.f32 -1.442695, %v234_v38  ;;  %v1892_v58 = vld [vmem:[#allocation8 + $0xd8] sm:$0xff]   ;;  %v1896_v62 = vld [vmem:[#allocation8 + $0xe0] sm:$0xff]   ;;  %v1900_v3 = vld [vmem:[#allocation8 + $0xe8] sm:$0xff]   ;;  %v487_v17 = vshrl.u32 %v486_v16, 7 }
  0x77   :  { %v1893_v59 = vld [vmem:[#allocation8 + $0x18] sm:$0xff]   ;;  %v1897_v63 = vld [vmem:[#allocation8 + $0x20] sm:$0xff]   ;;  %v1901_v4 = vld [vmem:[#allocation8 + $0x28] sm:$0xff]  }
  0x78   :  { %412 = vmatpush1.bf16.msra.mxu0 %v1859_v19  ;;  %453 = vmatpush1.bf16.msra.mxu1 %v1860_v20  ;;  %1991 = vpow2.f32 %v1591_v39  ;;  %v1894_v60 = vld [vmem:[#allocation8 + $0x98] sm:$0xff]   ;;  %v1898_v1 = vld [vmem:[#allocation8 + $0xa0] sm:$0xff]   ;;  %v1902_v5 = vld [vmem:[#allocation8 + $0xa8] sm:$0xff]   ;;  %v2334_v18 = vsub.s32 0, %v487_v17  ;;  %v2336_v19 = vsub.s32 2, %v487_v17 }
  0x79   :  { %413 = vmatprep.subr.bf16.mxu0 %v1861_v21  ;;  %454 = vmatprep.subr.bf16.mxu1 %v1863_v22  ;;  %v1903_v6 = vld [vmem:[#allocation8 + $0x70] sm:$0xff]   ;;  %v1907_v10 = vld [vmem:[#allocation8 + $0x78] sm:$0xff]   ;;  %v2341_v21 = vsub.s32 1, %v487_v17  ;;  %v2343_v22 = vsub.s32 3, %v487_v17 }
  0x7a   :  { %v1904_v7 = vld [vmem:[#allocation8 + $0xf0] sm:$0xff]   ;;  %v1908_v11 = vld [vmem:[#allocation8 + $0xf8] sm:$0xff]  }
  0x7b   :  { %v1905_v8 = vld [vmem:[#allocation8 + $0x30] sm:$0xff]   ;;  %v1909_v12 = vld [vmem:[#allocation8 + $0x38] sm:$0xff]  }
  0x7c   :  { %414 = vmatpush1.bf16.msra.mxu0 %v1865_v23  ;;  %455 = vmatpush1.bf16.msra.mxu1 %v1866_v24  ;;  %v1906_v9 = vld [vmem:[#allocation8 + $0xb0] sm:$0xff]   ;;  %v1910_v13 = vld [vmem:[#allocation8 + $0xb8] sm:$0xff]  }
  0x7d   :  { %415 = vmatprep.subr.bf16.mxu0 %v1867_v25  ;;  %456 = vmatprep.subr.bf16.mxu1 %v1869_v26  ;;  %v1913_v14 = vld [vmem:[#allocation9 + $0x4] ss:$16 sps:$4 sm:$0xff]   ;;  %v1916_v15 = vld [vmem:[#allocation9 + $0xc] ss:$16 sps:$4 sm:$0xff]   ;;  %v1914_v16 = vld [vmem:[#allocation9 + $0x8] ss:$16 sps:$4 sm:$0xff]  }
  0x7e   :  { %v154_v20 = vld [vmem:[%s2399_s6] sm:$0xf] }
  0x7f   :  { %v155_v23 = vld [vmem:[%s2400_s7] sm:$0xf]  ;;  %v489_v24 = vrot.slane %v154_v20, %v2334_v18  ;;  %v497_v25 = vrot.slane %v154_v20, %v2336_v19  ;;  %v493_v26 = vrot.slane %v154_v20, %v2341_v21  ;;  %v501_v27 = vrot.slane %v154_v20, %v2343_v22 }
  0x80   :  { %416 = vmatpush1.bf16.msra.mxu0 %v1871_v29  ;;  %457 = vmatpush1.bf16.msra.mxu1 %v1872_v30  ;;  %v514_v28 = vrot.slane %v155_v23, %v2334_v18  ;;  %v522_v29 = vrot.slane %v155_v23, %v2336_v19  ;;  %v518_v32 = vrot.slane %v155_v23, %v2341_v21  ;;  %v1919_v17 = vld [vmem:[#allocation9 + $0x24] ss:$16 sps:$4 sm:$0xff]  }
  0x81   :  { %417 = vmatprep.subr.bf16.mxu0 %v1873_v33  ;;  %458 = vmatprep.subr.bf16.mxu1 %v1875_v34  ;;  %v526_v33 = vrot.slane %v155_v23, %v2343_v22  ;;  %v1922_v23 = vld [vmem:[#allocation9 + $0x2c] ss:$16 sps:$4 sm:$0xff]  }
  0x82   :  { %v1992_v40 = vpop.eup %1991 }
  0x83   :  { %v238_v41 = vadd.f32 1.0, %v1992_v40 }
  0x84   :  { %418 = vmatpush1.bf16.msra.mxu0 %v1877_v36  ;;  %459 = vmatpush1.bf16.msra.mxu1 %v1878_v37 }
  0x85   :  { %1993 = vrcp.f32 %v238_v41  ;;  %1732 = vmatprep.subr.bf16.mxu0 %v1879_v45  ;;  %1754 = vmatprep.subr.bf16.mxu1 %v1880_v46 }
  0x8f   :  { %v1994_v42 = vpop.eup %1993 }
  0x90   :  { %v241_v43 = vmul.f32 %v1994_v42, %v234_v38 }
  0x92   :  { %v242_v44 = vpack.c.bf16 %v241_v43, %v241_v43 }
  0x94   :  { %436 = vmatmul.mubr.bf16.vlgmr.msra.gmra.mrb[0].mxu0 %v242_v44  ;;  %477 = vmatmul.mubr.bf16.vlgmr.msra.gmra.mrb[0].mxu1 %v242_v44 }
  0x95   :  { %1733 = vmatpush3.bf16.msra.mxu0 %v1881_v47  ;;  %1755 = vmatpush3.bf16.msra.mxu1 %v1882_v48 }
  0x96   :  { %1734 = vmatprep.subr.bf16.mxu0 %v1883_v49  ;;  %1756 = vmatprep.subr.bf16.mxu1 %v1884_v50 }
  0x99   :  { %1735 = vmatpush3.bf16.msra.mxu0 %v1885_v51  ;;  %1757 = vmatpush3.bf16.msra.mxu1 %v1886_v52  ;;  %v839_v52 = vld [vmem:[%s2395_s2] sm:$0xf] }
  0x9a   :  { %1736 = vmatprep.subr.bf16.mxu0 %v1887_v53  ;;  %1758 = vmatprep.subr.bf16.mxu1 %v1888_v54  ;;  %v940_v53 = vunpack.c.l.bf16 %v839_v52  ;;  %v1956_v52 = vld [vmem:[#allocation9 + $0xe8] ss:$16 sps:$4 sm:$0xff]  }
  0x9d   :  { %1737 = vmatpush3.bf16.msra.mxu0 %v1889_v55  ;;  %1759 = vmatpush3.bf16.msra.mxu1 %v1890_v56  ;;  %v1660_v55 = vld [vmem:[%s2402_s9] ss:$0 sm:$0xff] }
  0x9e   :  { %1738 = vmatprep.subr.bf16.mxu0 %v1891_v57  ;;  %1760 = vmatprep.subr.bf16.mxu1 %v1892_v58 }
  0xa1   :  { %1739 = vmatpush3.bf16.msra.mxu0 %v1893_v59  ;;  %1761 = vmatpush3.bf16.msra.mxu1 %v1894_v60 }
  0xa2   :  { %1740 = vmatprep.subr.bf16.mxu0 %v1895_v61  ;;  %1762 = vmatprep.subr.bf16.mxu1 %v1896_v62  ;;  %v947_v62 = vmul.f32 %v1660_v55, %v940_v53  ;;  %v1960_v55 = vld [vmem:[#allocation11 + $0xc0] sm:$0xff]  }
  0xa5   :  { %1741 = vmatpush3.bf16.msra.mxu0 %v1897_v63  ;;  %1763 = vmatpush3.bf16.msra.mxu1 %v1898_v1  ;;  %v1661_v1 = vld [vmem:[%s2403_s10] ss:$0 sm:$0xff] }
  0xa6   :  { %1742 = vmatprep.subr.bf16.mxu0 %v1899_v2  ;;  %1764 = vmatprep.subr.bf16.mxu1 %v1900_v3  ;;  %v2365_v2 = vadd.f32 %v1661_v1, %v947_v62  ;;  %v1967_v62 = vld [vmem:[#allocation11 + $0x50] sm:$0xff]  }
  0xa7   :  { %v1969_v1 = vld [vmem:[#allocation11 + $0x10] sm:$0xff]  }
  0xa8   :  { %v1662_v3 = vmul.f32 -1.442695, %v2365_v2 }
  0xa9   :  { %1743 = vmatpush3.bf16.msra.mxu0 %v1901_v4  ;;  %1765 = vmatpush3.bf16.msra.mxu1 %v1902_v5 }
  0xaa   :  { %1744 = vmatprep.subr.bf16.mxu0 %v1903_v6  ;;  %1766 = vmatprep.subr.bf16.mxu1 %v1904_v7 }
  0xad   :  { %1745 = vmatpush3.bf16.msra.mxu0 %v1905_v8  ;;  %1767 = vmatpush3.bf16.msra.mxu1 %v1906_v9 }
  0xae   :  { %1746 = vmatprep.subr.bf16.mxu0 %v1907_v10  ;;  %1768 = vmatprep.subr.bf16.mxu1 %v1908_v11 }
  0xb1   :  { %1747 = vmatpush3.bf16.msra.mxu0 %v1909_v12  ;;  %1769 = vmatpush3.bf16.msra.mxu1 %v1910_v13  ;;  %v1911_v13 = vld [vmem:[#allocation9] ss:$16 sps:$4 sm:$0xff]  }
  0xb2   :  { %1123 = vmatprep.subr.bf16.mxu0 %v1913_v14  ;;  %1164 = vmatprep.subr.bf16.mxu1 %v1916_v15 }
 0x167   :  { %v437_v30 = vpop.f32.mrb[0].mxu0  ;;  %v478_v31 = vpop.f32.mrb[0].mxu1 }
 0x168   :  { %v506_v34 = vmul.f32 %v489_v24, %v437_v30  ;;  %v508_v35 = vmul.f32 %v497_v25, %v478_v31  ;;  %v439_v36 = vpop.f32.mrb[1].mxu0  ;;  %v480_v37 = vpop.f32.mrb[1].mxu1  ;;  %v1917_v24 = vld [vmem:[#allocation9 + $0x20] ss:$16 sps:$4 sm:$0xff]   ;;  %v1920_v25 = vld [vmem:[#allocation9 + $0x28] ss:$16 sps:$4 sm:$0xff]  }
 0x169   :  { %v507_v38 = vmul.f32 %v493_v26, %v439_v36  ;;  %v509_v39 = vmul.f32 %v501_v27, %v480_v37  ;;  %v441_v40 = vpop.f32.mrb[2].mxu0  ;;  %v482_v41 = vpop.f32.mrb[2].mxu1  ;;  %v1925_v26 = vld [vmem:[#allocation9 + $0x44] ss:$16 sps:$4 sm:$0xff]   ;;  %v1928_v27 = vld [vmem:[#allocation9 + $0x4c] ss:$16 sps:$4 sm:$0xff]  }
 0x16a   :  { %v531_v42 = vadd.f32 %v514_v28, %v506_v34  ;;  %v533_v43 = vadd.f32 %v522_v29, %v508_v35  ;;  %v442_v44 = vpop.f32.mrb[3].mxu0  ;;  %v483_v45 = vpop.f32.mrb[3].mxu1  ;;  %v1923_v29 = vld [vmem:[#allocation9 + $0x40] ss:$16 sps:$4 sm:$0xff]   ;;  %v1926_v30 = vld [vmem:[#allocation9 + $0x48] ss:$16 sps:$4 sm:$0xff]  }
 0x16b   :  { %v532_v46 = vadd.f32 %v518_v32, %v507_v38  ;;  %v534_v47 = vadd.f32 %v526_v33, %v509_v39  ;;  %v1931_v31 = vld [vmem:[#allocation9 + $0x64] ss:$16 sps:$4 sm:$0xff]   ;;  %v1934_v32 = vld [vmem:[#allocation9 + $0x6c] ss:$16 sps:$4 sm:$0xff]   ;;  %v1929_v34 = vld [vmem:[#allocation9 + $0x60] ss:$16 sps:$4 sm:$0xff]  }
 0x16c   :  { %v1624_v48 = vmul.f32 -1.442695, %v531_v42  ;;  %v1626_v49 = vmul.f32 -1.442695, %v533_v43  ;;  %v1932_v35 = vld [vmem:[#allocation9 + $0x68] ss:$16 sps:$4 sm:$0xff]  }
 0x16d   :  { %v1625_v50 = vmul.f32 -1.442695, %v532_v46  ;;  %v1627_v51 = vmul.f32 -1.442695, %v534_v47  ;;  %v1937_v36 = vld [vmem:[#allocation9 + $0x84] ss:$16 sps:$4 sm:$0xff]  }
 0x16e   :  { %1995 = vpow2.f32 %v1624_v48  ;;  %v1940_v37 = vld [vmem:[#allocation9 + $0x8c] ss:$16 sps:$4 sm:$0xff]   ;;  %v1938_v38 = vld [vmem:[#allocation9 + $0x88] ss:$16 sps:$4 sm:$0xff]   ;;  %v1943_v39 = vld [vmem:[#allocation9 + $0xa4] ss:$16 sps:$4 sm:$0xff]  }
 0x16f   :  { %1997 = vpow2.f32 %v1626_v49  ;;  %v1946_v40 = vld [vmem:[#allocation9 + $0xac] ss:$16 sps:$4 sm:$0xff]   ;;  %v1941_v41 = vld [vmem:[#allocation9 + $0xa0] ss:$16 sps:$4 sm:$0xff]   ;;  %v1955_v48 = vld [vmem:[#allocation9 + $0xe4] ss:$16 sps:$4 sm:$0xff]  }
 0x170   :  { %1999 = vpow2.f32 %v1625_v50  ;;  %v1952_v44 = vld [vmem:[#allocation9 + $0xcc] ss:$16 sps:$4 sm:$0xff]  }
 0x171   :  { %2001 = vpow2.f32 %v1627_v51  ;;  %v1958_v49 = vld [vmem:[#allocation9 + $0xec] ss:$16 sps:$4 sm:$0xff]   ;;  %v1953_v51 = vld [vmem:[#allocation9 + $0xe0] ss:$16 sps:$4 sm:$0xff]  }
 0x178   :  { %v1996_v54 = vpop.eup %1995 }
 0x179   :  { %v1998_v56 = vpop.eup %1997  ;;  %v547_v57 = vadd.f32 1.0, %v1996_v54  ;;  %v1959_v54 = vld [vmem:[#allocation11 + $0x40] sm:$0xff]  }
 0x17a   :  { %v2000_v58 = vpop.eup %1999  ;;  %v549_v59 = vadd.f32 1.0, %v1998_v56  ;;  %v1961_v56 = vld [vmem:[#allocation11] sm:$0xff]  }
 0x17b   :  { %v2002_v60 = vpop.eup %2001  ;;  %2003 = vrcp.f32 %v547_v57  ;;  %v548_v61 = vadd.f32 1.0, %v2000_v58  ;;  %v1962_v57 = vld [vmem:[#allocation11 + $0x80] sm:$0xff]   ;;  %v1963_v58 = vld [vmem:[#allocation11 + $0x48] sm:$0xff]  }
 0x17c   :  { %2005 = vrcp.f32 %v549_v59  ;;  %v550_v63 = vadd.f32 1.0, %v2002_v60  ;;  %v1964_v59 = vld [vmem:[#allocation11 + $0xc8] sm:$0xff]  }
 0x17d   :  { %2007 = vrcp.f32 %v548_v61  ;;  %v1965_v60 = vld [vmem:[#allocation11 + $0x8] sm:$0xff]  }
 0x17e   :  { %2009 = vrcp.f32 %v550_v63  ;;  %v1966_v61 = vld [vmem:[#allocation11 + $0x88] sm:$0xff]   ;;  %v1968_v63 = vld [vmem:[#allocation11 + $0xd0] sm:$0xff]  }
 0x17f   :  { %2011 = vpow2.f32 %v1662_v3  ;;  %v1971_v3 = vld [vmem:[#allocation11 + $0x58] sm:$0xff]  }
 0x185   :  { %v2004_v4 = vpop.eup %2003 }
 0x186   :  { %v2006_v5 = vpop.eup %2005  ;;  %v559_v7 = vmul.f32 %v2004_v4, %v531_v42  ;;  %v1944_v42 = vld [vmem:[#allocation9 + $0xa8] ss:$16 sps:$4 sm:$0xff]  }
 0x187   :  { %v2008_v6 = vpop.eup %2007  ;;  %v561_v9 = vmul.f32 %v2006_v5, %v533_v43  ;;  %v1949_v43 = vld [vmem:[#allocation9 + $0xc4] ss:$16 sps:$4 sm:$0xff]   ;;  %v1972_v4 = vld [vmem:[#allocation11 + $0xd8] sm:$0xff]  }
 0x188   :  { %v2010_v8 = vpop.eup %2009  ;;  %v560_v10 = vmul.f32 %v2008_v6, %v532_v46  ;;  %v563_v14 = vpack.c.bf16 %v559_v7, %v559_v7  ;;  %v1947_v46 = vld [vmem:[#allocation9 + $0xc0] ss:$16 sps:$4 sm:$0xff]   ;;  %v1973_v5 = vld [vmem:[#allocation11 + $0x18] sm:$0xff]  }
 0x189   :  { %v562_v11 = vmul.f32 %v2010_v8, %v534_v47  ;;  %v565_v20 = vpack.c.bf16 %v561_v9, %v561_v9  ;;  %v2012_v28 = vpop.eup %2011  ;;  %v1950_v47 = vld [vmem:[#allocation9 + $0xc8] ss:$16 sps:$4 sm:$0xff]   ;;  %v1975_v7 = vld [vmem:[#allocation11 + $0x60] sm:$0xff]  }
 0x18a   :  { %v564_v12 = vpack.c.bf16 %v560_v10, %v560_v10  ;;  %v958_v33 = vadd.f32 1.0, %v2012_v28  ;;  %v1974_v6 = vld [vmem:[#allocation11 + $0x98] sm:$0xff]   ;;  %v1976_v8 = vld [vmem:[#allocation11 + $0xe0] sm:$0xff]  }
 0x18b   :  { %v566_v15 = vpack.c.bf16 %v562_v11, %v562_v11  ;;  %v1977_v9 = vld [vmem:[#allocation11 + $0x20] sm:$0xff]   ;;  %v1979_v11 = vld [vmem:[#allocation11 + $0x68] sm:$0xff]  }
 0x18c   :  { %791 = vmatprep.mubr.bf16.mxu0 %v564_v12  ;;  %2013 = vrcp.f32 %v958_v33  ;;  %v1978_v10 = vld [vmem:[#allocation11 + $0xa0] sm:$0xff]   ;;  %v1980_v12 = vld [vmem:[#allocation11 + $0xe8] sm:$0xff]  }
 0x18d   :  { %831 = vmatprep.mubr.bf16.mxu1 %v566_v15  ;;  %792 = vmatmul.mubr.bf16.vlgmr.msra.gmra.mrb[4].mxu0 %v563_v14  ;;  %v1982_v14 = vld [vmem:[#allocation11 + $0xa8] sm:$0xff]   ;;  %v1983_v15 = vld [vmem:[#allocation11 + $0x70] sm:$0xff]  }
 0x18e   :  { %832 = vmatmul.mubr.bf16.vlgmr.msra.gmra.mrb[4].mxu1 %v565_v20  ;;  %1124 = vmatpush1.bf16.msra.mxu0 %v1911_v13  ;;  %v1981_v13 = vld [vmem:[#allocation11 + $0x28] sm:$0xff]   ;;  %v1986_v20 = vld [vmem:[#allocation11 + $0xb0] sm:$0xff]  }
 0x18f   :  { %1165 = vmatpush1.bf16.msra.mxu1 %v1914_v16  ;;  %1125 = vmatprep.subr.bf16.mxu0 %v1919_v17  ;;  %v1984_v16 = vld [vmem:[#allocation11 + $0xf0] sm:$0xff]  }
 0x190   :  { %1166 = vmatprep.subr.bf16.mxu1 %v1922_v23  ;;  %1155 = vmatprep.mubr.bf16.mxu0 %v2173_v0  ;;  %v1985_v17 = vld [vmem:[#allocation11 + $0x30] sm:$0xff]   ;;  %v1987_v23 = vld [vmem:[#allocation11 + $0x78] sm:$0xff]  }
 0x191   :  { %1196 = vmatprep.mubr.bf16.mxu1 %v2173_v0  ;;  %v1935_v0 = vld [vmem:[#allocation9 + $0x80] ss:$16 sps:$4 sm:$0xff]  }
 0x192   :  { %1126 = vmatpush1.bf16.msra.mxu0 %v1917_v24  ;;  %v1988_v24 = vld [vmem:[#allocation11 + $0xf8] sm:$0xff]  }
 0x193   :  { %1167 = vmatpush1.bf16.msra.mxu1 %v1920_v25  ;;  %1127 = vmatprep.subr.bf16.mxu0 %v1925_v26  ;;  %v1989_v25 = vld [vmem:[#allocation11 + $0x38] sm:$0xff]  }
 0x194   :  { %1168 = vmatprep.subr.bf16.mxu1 %v1928_v27  ;;  %v1990_v26 = vld [vmem:[#allocation11 + $0xb8] sm:$0xff]  }
 0x196   :  { %1128 = vmatpush1.bf16.msra.mxu0 %v1923_v29  ;;  %v2014_v45 = vpop.eup %2013 }
 0x197   :  { %1169 = vmatpush1.bf16.msra.mxu1 %v1926_v30  ;;  %1129 = vmatprep.subr.bf16.mxu0 %v1931_v31  ;;  %v961_v50 = vmul.f32 %v2014_v45, %v2365_v2  ;;  %v1970_v2 = vld [vmem:[#allocation11 + $0x90] sm:$0xff]  }
 0x198   :  { %1170 = vmatprep.subr.bf16.mxu1 %v1934_v32 }
 0x199   :  { %v962_v53 = vpack.c.bf16 %v961_v50, %v961_v50 }
 0x19a   :  { %1130 = vmatpush1.bf16.msra.mxu0 %v1929_v34 }
 0x19b   :  { %1171 = vmatpush1.bf16.msra.mxu1 %v1932_v35  ;;  %1131 = vmatprep.subr.bf16.mxu0 %v1937_v36 }
 0x19c   :  { %1172 = vmatprep.subr.bf16.mxu1 %v1940_v37 }
 0x19e   :  { %1132 = vmatpush1.bf16.msra.mxu0 %v1935_v0 }
 0x19f   :  { %1173 = vmatpush1.bf16.msra.mxu1 %v1938_v38  ;;  %1133 = vmatprep.subr.bf16.mxu0 %v1943_v39  ;;  %v874_v38 = vld [vmem:[%s2405_s12] sm:$0xf]  ;;  %s1574_s12 = sld [smem:[#allocation3]] }
 0x1a0   :  { %1174 = vmatprep.subr.bf16.mxu1 %v1946_v40  ;;  %v875_v39 = vld [vmem:[%s2406_s13] sm:$0xf]  ;;  %v1209_v40 = vrot.slane %v874_v38, %v2334_v18  ;;  %s1731_s13 = sld [smem:[#allocation3 + $0x1]] }
 0x1a2   :  { %1134 = vmatpush1.bf16.msra.mxu0 %v1941_v41  ;;  %v1217_v41 = vrot.slane %v874_v38, %v2336_v19 }
 0x1a3   :  { %1175 = vmatpush1.bf16.msra.mxu1 %v1944_v42  ;;  %1135 = vmatprep.subr.bf16.mxu0 %v1949_v43  ;;  %v1213_v42 = vrot.slane %v874_v38, %v2341_v21  ;;  %v1234_v43 = vrot.slane %v875_v39, %v2334_v18 }
 0x1a4   :  { %1176 = vmatprep.subr.bf16.mxu1 %v1952_v44  ;;  %v1221_v44 = vrot.slane %v874_v38, %v2343_v22 }
 0x1a6   :  { %1136 = vmatpush1.bf16.msra.mxu0 %v1947_v46  ;;  %v1242_v46 = vrot.slane %v875_v39, %v2336_v19 }
 0x1a7   :  { %1177 = vmatpush1.bf16.msra.mxu1 %v1950_v47  ;;  %1137 = vmatprep.subr.bf16.mxu0 %v1955_v48  ;;  %v1238_v47 = vrot.slane %v875_v39, %v2341_v21 }
 0x1a8   :  { %1178 = vmatprep.subr.bf16.mxu1 %v1958_v49 }
 0x1aa   :  { %1138 = vmatpush1.bf16.msra.mxu0 %v1953_v51  ;;  %v1246_v51 = vrot.slane %v875_v39, %v2343_v22 }
 0x1ab   :  { %1179 = vmatpush1.bf16.msra.mxu1 %v1956_v52  ;;  %1776 = vmatprep.subr.bf16.mxu0 %v1959_v54 }
 0x1ac   :  { %1798 = vmatprep.subr.bf16.mxu1 %v1960_v55 }
 0x1ad   :  { %1156 = vmatmul.mubr.bf16.vlgmr.msra.gmra.mrb[8].mxu0 %v962_v53 }
 0x1ae   :  { %1197 = vmatmul.mubr.bf16.vlgmr.msra.gmra.mrb[8].mxu1 %v962_v53  ;;  %1777 = vmatpush3.bf16.msra.mxu0 %v1961_v56 }
 0x1af   :  { %1799 = vmatpush3.bf16.msra.mxu1 %v1962_v57  ;;  %1778 = vmatprep.subr.bf16.mxu0 %v1963_v58 }
 0x1b0   :  { %1800 = vmatprep.subr.bf16.mxu1 %v1964_v59 }
 0x1b2   :  { %1779 = vmatpush3.bf16.msra.mxu0 %v1965_v60 }
 0x1b3   :  { %1801 = vmatpush3.bf16.msra.mxu1 %v1966_v61  ;;  %1780 = vmatprep.subr.bf16.mxu0 %v1967_v62 }
 0x1b4   :  { %1802 = vmatprep.subr.bf16.mxu1 %v1968_v63 }
 0x1b6   :  { %1781 = vmatpush3.bf16.msra.mxu0 %v1969_v1 }
 0x1b7   :  { %1803 = vmatpush3.bf16.msra.mxu1 %v1970_v2  ;;  %1782 = vmatprep.subr.bf16.mxu0 %v1971_v3 }
 0x1b8   :  { %1804 = vmatprep.subr.bf16.mxu1 %v1972_v4 }
 0x1ba   :  { %1783 = vmatpush3.bf16.msra.mxu0 %v1973_v5 }
 0x1bb   :  { %1805 = vmatpush3.bf16.msra.mxu1 %v1974_v6  ;;  %1784 = vmatprep.subr.bf16.mxu0 %v1975_v7 }
 0x1bc   :  { %1806 = vmatprep.subr.bf16.mxu1 %v1976_v8 }
 0x1be   :  { %1785 = vmatpush3.bf16.msra.mxu0 %v1977_v9 }
 0x1bf   :  { %1807 = vmatpush3.bf16.msra.mxu1 %v1978_v10  ;;  %1786 = vmatprep.subr.bf16.mxu0 %v1979_v11 }
 0x1c0   :  { %1808 = vmatprep.subr.bf16.mxu1 %v1980_v12 }
 0x1c2   :  { %1787 = vmatpush3.bf16.msra.mxu0 %v1981_v13 }
 0x1c3   :  { %1809 = vmatpush3.bf16.msra.mxu1 %v1982_v14  ;;  %1788 = vmatprep.subr.bf16.mxu0 %v1983_v15 }
 0x1c4   :  { %1810 = vmatprep.subr.bf16.mxu1 %v1984_v16 }
 0x1c6   :  { %1789 = vmatpush3.bf16.msra.mxu0 %v1985_v17 }
 0x1c7   :  { %1811 = vmatpush3.bf16.msra.mxu1 %v1986_v20  ;;  %1790 = vmatprep.subr.bf16.mxu0 %v1987_v23 }
 0x1c8   :  { %1812 = vmatprep.subr.bf16.mxu1 %v1988_v24 }
 0x1ca   :  { %1791 = vmatpush3.bf16.msra.mxu0 %v1989_v25 }
 0x1cb   :  { %1813 = vmatpush3.bf16.msra.mxu1 %v1990_v26 }
 0x260   :  { %v1748_v27 = vpop.f32.mrb[4].mxu0 }
 0x261   :  { %v1770_v28 = vpop.f32.mrb[4].mxu1  ;;  %v1749_v29 = vpop.f32.mrb[5].mxu0 }
 0x262   :  { %v1750_v30 = vadd.f32 %v1749_v29, %v1748_v27  ;;  %v1771_v31 = vpop.f32.mrb[5].mxu1  ;;  %v1751_v32 = vpop.f32.mrb[6].mxu0 }
 0x263   :  { %v1772_v33 = vadd.f32 %v1771_v31, %v1770_v28  ;;  %v1773_v34 = vpop.f32.mrb[6].mxu1  ;;  %v1752_v35 = vpop.f32.mrb[7].mxu0 }
 0x264   :  { %v1774_v36 = vpop.f32.mrb[7].mxu1 }
 0x265   :  { %v2371_v37 = vadd.f32 %v1772_v33, %v1750_v30 }
 0x267   :  { %v1562_v0 = vmul.f32 %v2371_v37, %v2371_v37 }
 0x269   :  { %1563 = vadd.xlane.f32.xlu0 %v1562_v0 }
 0x280   :  { %v1157_v45 = vpop.f32.mrb[8].mxu0 }
 0x281   :  { %v1226_v48 = vmul.f32 %v1209_v40, %v1157_v45  ;;  %v1198_v49 = vpop.f32.mrb[8].mxu1  ;;  %v1159_v50 = vpop.f32.mrb[9].mxu0 }
 0x282   :  { %v1228_v52 = vmul.f32 %v1217_v41, %v1198_v49  ;;  %v1227_v53 = vmul.f32 %v1213_v42, %v1159_v50  ;;  %v1200_v54 = vpop.f32.mrb[9].mxu1  ;;  %v1161_v55 = vpop.f32.mrb[10].mxu0 }
 0x283   :  { %v1251_v56 = vadd.f32 %v1234_v43, %v1226_v48  ;;  %v1229_v57 = vmul.f32 %v1221_v44, %v1200_v54  ;;  %v1202_v58 = vpop.f32.mrb[10].mxu1  ;;  %v1162_v18 = vpop.f32.mrb[11].mxu0  ;;  %v1578_v48 = vstv %s1731_s13 }
 0x284   :  { %v1253_v59 = vadd.f32 %v1242_v46, %v1228_v52  ;;  %v1252_v60 = vadd.f32 %v1238_v47, %v1227_v53  ;;  %v1203_v61 = vpop.f32.mrb[11].mxu1  ;;  %v1576_v46 = vstv %s1574_s12 }
 0x285   :  { %v1695_v62 = vmul.f32 -1.442695, %v1251_v56  ;;  %v1254_v19 = vadd.f32 %v1246_v51, %v1229_v57 }
 0x286   :  { %v1697_v63 = vmul.f32 -1.442695, %v1253_v59  ;;  %v1696_v21 = vmul.f32 -1.442695, %v1252_v60 }
 0x287   :  { %2015 = vpow2.f32 %v1695_v62  ;;  %v1698_v1 = vmul.f32 -1.442695, %v1254_v19 }
 0x288   :  { %2017 = vpow2.f32 %v1697_v63 }
 0x289   :  { %2019 = vpow2.f32 %v1696_v21 }
 0x28a   :  { %2021 = vpow2.f32 %v1698_v1 }
 0x291   :  { %v2016_v22 = vpop.eup %2015 }
 0x292   :  { %v2018_v2 = vpop.eup %2017  ;;  %v1267_v3 = vadd.f32 1.0, %v2016_v22 }
 0x293   :  { %v2020_v4 = vpop.eup %2019  ;;  %v1269_v5 = vadd.f32 1.0, %v2018_v2 }
 0x294   :  { %v2022_v6 = vpop.eup %2021  ;;  %2023 = vrcp.f32 %v1267_v3  ;;  %v1268_v7 = vadd.f32 1.0, %v2020_v4 }
 0x295   :  { %2025 = vrcp.f32 %v1269_v5  ;;  %v1270_v8 = vadd.f32 1.0, %v2022_v6 }
 0x296   :  { %2027 = vrcp.f32 %v1268_v7 }
 0x297   :  { %2029 = vrcp.f32 %v1270_v8 }
 0x29e   :  { %v2024_v9 = vpop.eup %2023 }
 0x29f   :  { %v2026_v10 = vpop.eup %2025  ;;  %v1279_v12 = vmul.f32 %v2024_v9, %v1251_v56 }
 0x2a0   :  { %v2028_v11 = vpop.eup %2027  ;;  %v1281_v14 = vmul.f32 %v2026_v10, %v1253_v59 }
 0x2a1   :  { %v2030_v13 = vpop.eup %2029  ;;  %v1280_v15 = vmul.f32 %v2028_v11, %v1252_v60  ;;  %v1283_v20 = vpack.c.bf16 %v1279_v12, %v1279_v12 }
 0x2a2   :  { %v1282_v16 = vmul.f32 %v2030_v13, %v1254_v19  ;;  %v1285_v24 = vpack.c.bf16 %v1281_v14, %v1281_v14 }
 0x2a3   :  { %v1284_v17 = vpack.c.bf16 %v1280_v15, %v1280_v15 }
 0x2a4   :  { %v1286_v23 = vpack.c.bf16 %v1282_v16, %v1282_v16 }
 0x2a5   :  { %1511 = vmatprep.mubr.bf16.mxu0 %v1284_v17 }
 0x2a6   :  { %1551 = vmatprep.mubr.bf16.mxu1 %v1286_v23  ;;  %1512 = vmatmul.mubr.bf16.vlgmr.msra.gmra.mrb[12].mxu0 %v1283_v20 }
 0x2a7   :  { %1552 = vmatmul.mubr.bf16.vlgmr.msra.gmra.mrb[12].mxu1 %v1285_v24 }
 0x2f6   :  { %v1564_v38 = vpop.xlane.xlu0 %1563 }
 0x2f7   :  { %v1568_v39 = vmax.f32 %v1564_v38, 1e-24 }
 0x2f9   :  { %2031 = vrsqrt.f32 %v1568_v39 }
 0x303   :  { %v2032_v43 = vpop.eup %2031 }
 0x379   :  { %v1792_v25 = vpop.f32.mrb[12].mxu0 }
 0x37a   :  { %v1814_v26 = vpop.f32.mrb[12].mxu1  ;;  %v1793_v27 = vpop.f32.mrb[13].mxu0 }
 0x37b   :  { %v1794_v28 = vadd.f32 %v1793_v27, %v1792_v25  ;;  %v1815_v29 = vpop.f32.mrb[13].mxu1  ;;  %v1795_v30 = vpop.f32.mrb[14].mxu0 }
 0x37c   :  { %v1816_v31 = vadd.f32 %v1815_v29, %v1814_v26  ;;  %v1817_v32 = vpop.f32.mrb[14].mxu1  ;;  %v1796_v33 = vpop.f32.mrb[15].mxu0 }
 0x37d   :  { %v1818_v34 = vpop.f32.mrb[15].mxu1 }
 0x37e   :  { %v1554_v35 = vadd.f32 %v1816_v31, %v1794_v28 }
 0x380   :  { %v1565_v36 = vmul.f32 %v1554_v35, %v1554_v35  ;;  %v1559_v0 = vmul.f32 %v1554_v35, %v2371_v37 }
 0x382   :  { %1566 = vadd.xlane.f32.xlu0 %v1565_v36  ;;  %1560 = vadd.xlane.f32.xlu1 %v1559_v0 }
 0x40f   :  { %v1567_v40 = vpop.xlane.xlu0 %1566  ;;  %v1561_v42 = vpop.xlane.xlu1 %1560 }
 0x410   :  { %v1571_v41 = vmax.f32 %v1567_v40, 1e-24  ;;  %v1570_v44 = vmul.f32 %v2032_v43, %v1561_v42 }
 0x412   :  { %2033 = vrsqrt.f32 %v1571_v41 }
 0x41c   :  { %v2034_v45 = vpop.eup %2033 }
 0x41d   :  { %v1573_v47 = vmul.f32 %v2034_v45, %v1570_v44 }
 0x41f   :  { %v1577_v49 = vmul.f32 %v1576_v46, %v1573_v47 }
 0x421   :  { %v1579_v37 = vadd.f32 %v1578_v48, %v1577_v49 }
 0x423   :  { %1581 = vst.msk [vmem:[%s2408_s15] sm:$0xff] %vm1580_vm0, %v1579_v37 }
 0x424   :  { %1586 = vsyncpa [#allocation5], 1 }
 0x425   :  { %1587 = vsyncpa [#allocation7], 1 }
 0x426   :  { %1588 = vsyncpa [#allocation10], 1 }

</bundles_post_ra>
